<compile_context>
chip_gen: v5e
topology: v5e:2x2
jax: 0.10.0
libtpu: 0.0.40
codegen_flags: <defaults>
</compile_context>

<pallas_src>
import functools

import jax
import jax.numpy as jnp
from jax.experimental import pallas as pl
from jax.experimental.pallas import tpu as pltpu


def _round_up(v, m):
    return (v + m - 1) // m * m


def _telstm_kernel(x_ref, wih_ref, whh_ref, b_ref, wfc_ref, bfc_ref, out_ref,
                   *, n_samples):
    """Single-invocation TELSTM forward.

    x_ref   : (T*B, I)    compute dtype (bf16 by default); rows t*B:(t+1)*B are
                          the t-th chunk of the feature dim for the whole batch
    wih_ref : (I, 4H)     compute dtype, gate columns reordered to [i, f, o, g]
    whh_ref : (H, 4H)     compute dtype, same column reorder
    b_ref   : (1, 4H)     f32, b_ih + b_hh, same reorder
    wfc_ref : (H, O_pad)  compute dtype, zero-padded to a lane-dense O
    bfc_ref : (1, O_pad)  f32, zero-padded
    out_ref : (B, O_pad)  f32
    """
    T = n_samples
    TB, _ = x_ref.shape
    B = TB // T
    H = whh_ref.shape[0]

    # --- Hoisted input projection: one MXU matmul for all timesteps ---------
    # xw[t*B:(t+1)*B] == x_t @ W_ih^T + (b_ih + b_hh)        (f32 accumulation)
    xw = (jnp.dot(x_ref[...], wih_ref[...],
                  preferred_element_type=jnp.float32)
          + b_ref[...])                                      # (T*B, 4H) f32

    whh = whh_ref[...]

    # --- Sequential recurrence, fully unrolled (T is static & small) --------
    # State and gate arithmetic stay in f32; only matmul operands are cast to
    # the (bf16) weight dtype.
    h = jnp.zeros((B, H), jnp.float32)
    c = jnp.zeros((B, H), jnp.float32)
    for t in range(T):
        gates = xw[t * B:(t + 1) * B] + jnp.dot(
            h.astype(whh.dtype), whh, preferred_element_type=jnp.float32)
        # Columns reordered to [i, f, o, g]: one sigmoid slab + one tanh slab.
        sig = jax.nn.sigmoid(gates[:, :3 * H])
        g_g = jnp.tanh(gates[:, 3 * H:])
        i_g = sig[:, 0:H]
        f_g = sig[:, H:2 * H]
        o_g = sig[:, 2 * H:3 * H]
        c = f_g * c + i_g * g_g
        h = o_g * jnp.tanh(c)

    # --- Fused final Linear, lane-dense padded output ------------------------
    out_ref[...] = (jnp.dot(h.astype(wfc_ref.dtype), wfc_ref[...],
                            preferred_element_type=jnp.float32)
                    + bfc_ref[...])


@functools.partial(jax.jit, static_argnames=("n_samples", "compute_dtype"))
def telstm_forward(x, w_ih, w_hh, b_ih, b_hh, w_fc, b_fc, *, n_samples,
                   compute_dtype=jnp.bfloat16):
    """x: (B, n_samples * I); returns (B, O) float32."""
    B = x.shape[0]
    four_h, I = w_ih.shape
    H = four_h // 4
    O = w_fc.shape[0]
    O_pad = _round_up(max(O, 128), 128)

    # x[:, t*I:(t+1)*I] == x.reshape(B, T, I)[:, t, :]; stack chunks along rows
    # so row t*B + b is (chunk t, batch b).
    x_seq = jnp.transpose(x.reshape(B, n_samples, I), (1, 0, 2))   # (T, B, I)
    x_flat = x_seq.reshape(n_samples * B, I).astype(compute_dtype)

    # Reorder PyTorch LSTMCell gate rows [i, f, g, o] -> [i, f, o, g] so the
    # sigmoid gates are contiguous in the 4H axis.
    perm = jnp.concatenate([jnp.arange(0, 2 * H),
                            jnp.arange(3 * H, 4 * H),
                            jnp.arange(2 * H, 3 * H)])
    wih_t = w_ih[perm].T.astype(compute_dtype)                 # (I, 4H)
    whh_t = w_hh[perm].T.astype(compute_dtype)                 # (H, 4H)
    b = (b_ih + b_hh)[perm][None, :].astype(jnp.float32)       # (1, 4H) f32

    # Lane-dense fc: zero-pad the output dim up to a multiple of 128.
    wfc_t = jnp.zeros((H, O_pad), compute_dtype).at[:, :O].set(
        w_fc.T.astype(compute_dtype))
    bfc = jnp.zeros((1, O_pad), jnp.float32).at[0, :O].set(
        b_fc.astype(jnp.float32))

    out_pad = pl.pallas_call(
        functools.partial(_telstm_kernel, n_samples=n_samples),
        out_shape=jax.ShapeDtypeStruct((B, O_pad), jnp.float32),
        in_specs=[pl.BlockSpec(memory_space=pltpu.MemorySpace.VMEM)] * 6,
        out_specs=pl.BlockSpec(memory_space=pltpu.MemorySpace.VMEM),
        compiler_params=pltpu.CompilerParams(
            vmem_limit_bytes=32 * 1024 * 1024),
    )(x_flat, wih_t, whh_t, b, wfc_t, bfc)

    return out_pad[:, :O]


def telstm_reference(x, w_ih, w_hh, b_ih, b_hh, w_fc, b_fc, n_samples):
    """Pure-JAX mirror of the PyTorch TELSTM.forward (is_bn=False)."""
    B = x.shape[0]
    H = w_hh.shape[1]
    h = jnp.zeros((B, H), jnp.float32)
    c = jnp.zeros((B, H), jnp.float32)
    for x_t in jnp.split(x, n_samples, axis=1):
        gates = x_t @ w_ih.T + b_ih + h @ w_hh.T + b_hh
        i_g, f_g, g_g, o_g = jnp.split(gates, 4, axis=1)
        i_g = jax.nn.sigmoid(i_g)
        f_g = jax.nn.sigmoid(f_g)
        g_g = jnp.tanh(g_g)
        o_g = jax.nn.sigmoid(o_g)
        c = f_g * c + i_g * g_g
        h = o_g * jnp.tanh(c)
    return h @ w_fc.T + b_fc


if __name__ == "__main__":
    # Small shapes consistent with the module's forward:
    # input_size I per chunk, hidden H, output O, n_samples chunks.
    B, I, H, O, N_SAMPLES = 8, 16, 32, 8, 8

    key = jax.random.PRNGKey(0)
    kx, k1, k2, k3, k4, k5, k6 = jax.random.split(key, 7)

    # Deterministic PyTorch-style uniform(-1/sqrt(H), 1/sqrt(H)) init.
    s = 1.0 / jnp.sqrt(jnp.float32(H))
    w_ih = jax.random.uniform(k1, (4 * H, I), jnp.float32, -s, s)
    w_hh = jax.random.uniform(k2, (4 * H, H), jnp.float32, -s, s)
    b_ih = jax.random.uniform(k3, (4 * H,), jnp.float32, -s, s)
    b_hh = jax.random.uniform(k4, (4 * H,), jnp.float32, -s, s)
    w_fc = jax.random.uniform(k5, (O, H), jnp.float32, -s, s)
    b_fc = jax.random.uniform(k6, (O,), jnp.float32, -s, s)

    x = jax.random.normal(kx, (B, N_SAMPLES * I), jnp.float32)

    ref = telstm_reference(x, w_ih, w_hh, b_ih, b_hh, w_fc, b_fc, N_SAMPLES)

    # f32 operand path: validates kernel structure tightly vs. the reference.
    out_f32 = telstm_forward(x, w_ih, w_hh, b_ih, b_hh, w_fc, b_fc,
                             n_samples=N_SAMPLES, compute_dtype=jnp.float32)
    out_f32 = jax.block_until_ready(out_f32)
    assert out_f32.shape == (B, O)
    assert jnp.allclose(out_f32, ref, atol=1e-4, rtol=1e-4), (
        f"f32 max abs err {jnp.max(jnp.abs(out_f32 - ref))}")

    # Default bf16-operand path (MXU-friendly on v5e/v6e/v7x); f32 state keeps
    # the drift small vs. the f32 reference.
    out_bf16 = telstm_forward(x, w_ih, w_hh, b_ih, b_hh, w_fc, b_fc,
                              n_samples=N_SAMPLES)
    out_bf16 = jax.block_until_ready(out_bf16)
    assert out_bf16.shape == (B, O)
    assert jnp.allclose(out_bf16, ref, atol=5e-2, rtol=5e-2), (
        f"bf16 max abs err {jnp.max(jnp.abs(out_bf16 - ref))}")

    print("KERNEL_OK")
</pallas_src>

<mosaic_0001>
module attributes {stable_mosaic.version = 11 : i64} {
  func.func @_telstm_kernel(%arg0: memref<64x16xf32, #tpu.memory_space<vmem>>, %arg1: memref<16x128xf32, #tpu.memory_space<vmem>>, %arg2: memref<32x128xf32, #tpu.memory_space<vmem>>, %arg3: memref<1x128xf32, #tpu.memory_space<vmem>>, %arg4: memref<32x128xf32, #tpu.memory_space<vmem>>, %arg5: memref<1x128xf32, #tpu.memory_space<vmem>>, %arg6: memref<8x128xf32, #tpu.memory_space<vmem>>) attributes {dimension_semantics = [], scalar_prefetch = 0 : i64, scratch_operands = 0 : i64, tpu.core_type = #tpu.core_type<tc>} {
    %c0 = arith.constant 0 : index
    %c0_0 = arith.constant 0 : index
    %0 = vector.load %arg0[%c0, %c0_0] : memref<64x16xf32, #tpu.memory_space<vmem>>, vector<64x16xf32>
    %c0_1 = arith.constant 0 : index
    %c0_2 = arith.constant 0 : index
    %1 = vector.load %arg1[%c0_1, %c0_2] : memref<16x128xf32, #tpu.memory_space<vmem>>, vector<16x128xf32>
    %cst = arith.constant dense<0.000000e+00> : vector<64x128xf32>
    %2 = tpu.matmul %0, %1, %cst {dimension_numbers = #tpu.dot_dimension_numbers<[1], [0], [0], [1], [0, 0, 1, 1], [], []>} : vector<64x16xf32>, vector<16x128xf32>, vector<64x128xf32> -> vector<64x128xf32>
    %c0_3 = arith.constant 0 : index
    %c0_4 = arith.constant 0 : index
    %3 = vector.load %arg3[%c0_3, %c0_4] : memref<1x128xf32, #tpu.memory_space<vmem>>, vector<1x128xf32>
    %4 = vector.broadcast %3 : vector<1x128xf32> to vector<64x128xf32>
    %5 = arith.addf %2, %4 : vector<64x128xf32>
    %c0_5 = arith.constant 0 : index
    %c0_6 = arith.constant 0 : index
    %6 = vector.load %arg2[%c0_5, %c0_6] : memref<32x128xf32, #tpu.memory_space<vmem>>, vector<32x128xf32>
    %cst_7 = arith.constant 0.000000e+00 : f32
    %7 = vector.broadcast %cst_7 : f32 to vector<8x32xf32>
    %cst_8 = arith.constant 0.000000e+00 : f32
    %8 = vector.broadcast %cst_8 : f32 to vector<8x32xf32>
    %9 = vector.extract_strided_slice %5 {offsets = [0, 0], sizes = [8, 128], strides = [1, 1]} : vector<64x128xf32> to vector<8x128xf32>
    %cst_9 = arith.constant dense<0.000000e+00> : vector<8x128xf32>
    %10 = tpu.matmul %7, %6, %cst_9 {dimension_numbers = #tpu.dot_dimension_numbers<[1], [0], [0], [1], [0, 0, 1, 1], [], []>} : vector<8x32xf32>, vector<32x128xf32>, vector<8x128xf32> -> vector<8x128xf32>
    %11 = arith.addf %9, %10 : vector<8x128xf32>
    %12 = vector.extract_strided_slice %11 {offsets = [0, 0], sizes = [8, 96], strides = [1, 1]} : vector<8x128xf32> to vector<8x96xf32>
    %13 = arith.negf %12 : vector<8x96xf32>
    %14 = math.exp %13 : vector<8x96xf32>
    %cst_10 = arith.constant 1.000000e+00 : f32
    %15 = vector.broadcast %cst_10 : f32 to vector<8x96xf32>
    %16 = arith.addf %15, %14 : vector<8x96xf32>
    %17 = arith.divf %15, %16 : vector<8x96xf32>
    %18 = vector.extract_strided_slice %11 {offsets = [0, 96], sizes = [8, 32], strides = [1, 1]} : vector<8x128xf32> to vector<8x32xf32>
    %19 = math.tanh %18 : vector<8x32xf32>
    %20 = vector.extract_strided_slice %17 {offsets = [0, 0], sizes = [8, 32], strides = [1, 1]} : vector<8x96xf32> to vector<8x32xf32>
    %21 = vector.extract_strided_slice %17 {offsets = [0, 32], sizes = [8, 32], strides = [1, 1]} : vector<8x96xf32> to vector<8x32xf32>
    %22 = vector.extract_strided_slice %17 {offsets = [0, 64], sizes = [8, 32], strides = [1, 1]} : vector<8x96xf32> to vector<8x32xf32>
    %23 = arith.mulf %21, %8 : vector<8x32xf32>
    %24 = arith.mulf %20, %19 : vector<8x32xf32>
    %25 = arith.addf %23, %24 : vector<8x32xf32>
    %26 = math.tanh %25 : vector<8x32xf32>
    %27 = arith.mulf %22, %26 : vector<8x32xf32>
    %28 = vector.extract_strided_slice %5 {offsets = [8, 0], sizes = [8, 128], strides = [1, 1]} : vector<64x128xf32> to vector<8x128xf32>
    %cst_11 = arith.constant dense<0.000000e+00> : vector<8x128xf32>
    %29 = tpu.matmul %27, %6, %cst_11 {dimension_numbers = #tpu.dot_dimension_numbers<[1], [0], [0], [1], [0, 0, 1, 1], [], []>} : vector<8x32xf32>, vector<32x128xf32>, vector<8x128xf32> -> vector<8x128xf32>
    %30 = arith.addf %28, %29 : vector<8x128xf32>
    %31 = vector.extract_strided_slice %30 {offsets = [0, 0], sizes = [8, 96], strides = [1, 1]} : vector<8x128xf32> to vector<8x96xf32>
    %32 = arith.negf %31 : vector<8x96xf32>
    %33 = math.exp %32 : vector<8x96xf32>
    %cst_12 = arith.constant 1.000000e+00 : f32
    %34 = vector.broadcast %cst_12 : f32 to vector<8x96xf32>
    %35 = arith.addf %34, %33 : vector<8x96xf32>
    %36 = arith.divf %34, %35 : vector<8x96xf32>
    %37 = vector.extract_strided_slice %30 {offsets = [0, 96], sizes = [8, 32], strides = [1, 1]} : vector<8x128xf32> to vector<8x32xf32>
    %38 = math.tanh %37 : vector<8x32xf32>
    %39 = vector.extract_strided_slice %36 {offsets = [0, 0], sizes = [8, 32], strides = [1, 1]} : vector<8x96xf32> to vector<8x32xf32>
    %40 = vector.extract_strided_slice %36 {offsets = [0, 32], sizes = [8, 32], strides = [1, 1]} : vector<8x96xf32> to vector<8x32xf32>
    %41 = vector.extract_strided_slice %36 {offsets = [0, 64], sizes = [8, 32], strides = [1, 1]} : vector<8x96xf32> to vector<8x32xf32>
    %42 = arith.mulf %40, %25 : vector<8x32xf32>
    %43 = arith.mulf %39, %38 : vector<8x32xf32>
    %44 = arith.addf %42, %43 : vector<8x32xf32>
    %45 = math.tanh %44 : vector<8x32xf32>
    %46 = arith.mulf %41, %45 : vector<8x32xf32>
    %47 = vector.extract_strided_slice %5 {offsets = [16, 0], sizes = [8, 128], strides = [1, 1]} : vector<64x128xf32> to vector<8x128xf32>
    %cst_13 = arith.constant dense<0.000000e+00> : vector<8x128xf32>
    %48 = tpu.matmul %46, %6, %cst_13 {dimension_numbers = #tpu.dot_dimension_numbers<[1], [0], [0], [1], [0, 0, 1, 1], [], []>} : vector<8x32xf32>, vector<32x128xf32>, vector<8x128xf32> -> vector<8x128xf32>
    %49 = arith.addf %47, %48 : vector<8x128xf32>
    %50 = vector.extract_strided_slice %49 {offsets = [0, 0], sizes = [8, 96], strides = [1, 1]} : vector<8x128xf32> to vector<8x96xf32>
    %51 = arith.negf %50 : vector<8x96xf32>
    %52 = math.exp %51 : vector<8x96xf32>
    %cst_14 = arith.constant 1.000000e+00 : f32
    %53 = vector.broadcast %cst_14 : f32 to vector<8x96xf32>
    %54 = arith.addf %53, %52 : vector<8x96xf32>
    %55 = arith.divf %53, %54 : vector<8x96xf32>
    %56 = vector.extract_strided_slice %49 {offsets = [0, 96], sizes = [8, 32], strides = [1, 1]} : vector<8x128xf32> to vector<8x32xf32>
    %57 = math.tanh %56 : vector<8x32xf32>
    %58 = vector.extract_strided_slice %55 {offsets = [0, 0], sizes = [8, 32], strides = [1, 1]} : vector<8x96xf32> to vector<8x32xf32>
    %59 = vector.extract_strided_slice %55 {offsets = [0, 32], sizes = [8, 32], strides = [1, 1]} : vector<8x96xf32> to vector<8x32xf32>
    %60 = vector.extract_strided_slice %55 {offsets = [0, 64], sizes = [8, 32], strides = [1, 1]} : vector<8x96xf32> to vector<8x32xf32>
    %61 = arith.mulf %59, %44 : vector<8x32xf32>
    %62 = arith.mulf %58, %57 : vector<8x32xf32>
    %63 = arith.addf %61, %62 : vector<8x32xf32>
    %64 = math.tanh %63 : vector<8x32xf32>
    %65 = arith.mulf %60, %64 : vector<8x32xf32>
    %66 = vector.extract_strided_slice %5 {offsets = [24, 0], sizes = [8, 128], strides = [1, 1]} : vector<64x128xf32> to vector<8x128xf32>
    %cst_15 = arith.constant dense<0.000000e+00> : vector<8x128xf32>
    %67 = tpu.matmul %65, %6, %cst_15 {dimension_numbers = #tpu.dot_dimension_numbers<[1], [0], [0], [1], [0, 0, 1, 1], [], []>} : vector<8x32xf32>, vector<32x128xf32>, vector<8x128xf32> -> vector<8x128xf32>
    %68 = arith.addf %66, %67 : vector<8x128xf32>
    %69 = vector.extract_strided_slice %68 {offsets = [0, 0], sizes = [8, 96], strides = [1, 1]} : vector<8x128xf32> to vector<8x96xf32>
    %70 = arith.negf %69 : vector<8x96xf32>
    %71 = math.exp %70 : vector<8x96xf32>
    %cst_16 = arith.constant 1.000000e+00 : f32
    %72 = vector.broadcast %cst_16 : f32 to vector<8x96xf32>
    %73 = arith.addf %72, %71 : vector<8x96xf32>
    %74 = arith.divf %72, %73 : vector<8x96xf32>
    %75 = vector.extract_strided_slice %68 {offsets = [0, 96], sizes = [8, 32], strides = [1, 1]} : vector<8x128xf32> to vector<8x32xf32>
    %76 = math.tanh %75 : vector<8x32xf32>
    %77 = vector.extract_strided_slice %74 {offsets = [0, 0], sizes = [8, 32], strides = [1, 1]} : vector<8x96xf32> to vector<8x32xf32>
    %78 = vector.extract_strided_slice %74 {offsets = [0, 32], sizes = [8, 32], strides = [1, 1]} : vector<8x96xf32> to vector<8x32xf32>
    %79 = vector.extract_strided_slice %74 {offsets = [0, 64], sizes = [8, 32], strides = [1, 1]} : vector<8x96xf32> to vector<8x32xf32>
    %80 = arith.mulf %78, %63 : vector<8x32xf32>
    %81 = arith.mulf %77, %76 : vector<8x32xf32>
    %82 = arith.addf %80, %81 : vector<8x32xf32>
    %83 = math.tanh %82 : vector<8x32xf32>
    %84 = arith.mulf %79, %83 : vector<8x32xf32>
    %85 = vector.extract_strided_slice %5 {offsets = [32, 0], sizes = [8, 128], strides = [1, 1]} : vector<64x128xf32> to vector<8x128xf32>
    %cst_17 = arith.constant dense<0.000000e+00> : vector<8x128xf32>
    %86 = tpu.matmul %84, %6, %cst_17 {dimension_numbers = #tpu.dot_dimension_numbers<[1], [0], [0], [1], [0, 0, 1, 1], [], []>} : vector<8x32xf32>, vector<32x128xf32>, vector<8x128xf32> -> vector<8x128xf32>
    %87 = arith.addf %85, %86 : vector<8x128xf32>
    %88 = vector.extract_strided_slice %87 {offsets = [0, 0], sizes = [8, 96], strides = [1, 1]} : vector<8x128xf32> to vector<8x96xf32>
    %89 = arith.negf %88 : vector<8x96xf32>
    %90 = math.exp %89 : vector<8x96xf32>
    %cst_18 = arith.constant 1.000000e+00 : f32
    %91 = vector.broadcast %cst_18 : f32 to vector<8x96xf32>
    %92 = arith.addf %91, %90 : vector<8x96xf32>
    %93 = arith.divf %91, %92 : vector<8x96xf32>
    %94 = vector.extract_strided_slice %87 {offsets = [0, 96], sizes = [8, 32], strides = [1, 1]} : vector<8x128xf32> to vector<8x32xf32>
    %95 = math.tanh %94 : vector<8x32xf32>
    %96 = vector.extract_strided_slice %93 {offsets = [0, 0], sizes = [8, 32], strides = [1, 1]} : vector<8x96xf32> to vector<8x32xf32>
    %97 = vector.extract_strided_slice %93 {offsets = [0, 32], sizes = [8, 32], strides = [1, 1]} : vector<8x96xf32> to vector<8x32xf32>
    %98 = vector.extract_strided_slice %93 {offsets = [0, 64], sizes = [8, 32], strides = [1, 1]} : vector<8x96xf32> to vector<8x32xf32>
    %99 = arith.mulf %97, %82 : vector<8x32xf32>
    %100 = arith.mulf %96, %95 : vector<8x32xf32>
    %101 = arith.addf %99, %100 : vector<8x32xf32>
    %102 = math.tanh %101 : vector<8x32xf32>
    %103 = arith.mulf %98, %102 : vector<8x32xf32>
    %104 = vector.extract_strided_slice %5 {offsets = [40, 0], sizes = [8, 128], strides = [1, 1]} : vector<64x128xf32> to vector<8x128xf32>
    %cst_19 = arith.constant dense<0.000000e+00> : vector<8x128xf32>
    %105 = tpu.matmul %103, %6, %cst_19 {dimension_numbers = #tpu.dot_dimension_numbers<[1], [0], [0], [1], [0, 0, 1, 1], [], []>} : vector<8x32xf32>, vector<32x128xf32>, vector<8x128xf32> -> vector<8x128xf32>
    %106 = arith.addf %104, %105 : vector<8x128xf32>
    %107 = vector.extract_strided_slice %106 {offsets = [0, 0], sizes = [8, 96], strides = [1, 1]} : vector<8x128xf32> to vector<8x96xf32>
    %108 = arith.negf %107 : vector<8x96xf32>
    %109 = math.exp %108 : vector<8x96xf32>
    %cst_20 = arith.constant 1.000000e+00 : f32
    %110 = vector.broadcast %cst_20 : f32 to vector<8x96xf32>
    %111 = arith.addf %110, %109 : vector<8x96xf32>
    %112 = arith.divf %110, %111 : vector<8x96xf32>
    %113 = vector.extract_strided_slice %106 {offsets = [0, 96], sizes = [8, 32], strides = [1, 1]} : vector<8x128xf32> to vector<8x32xf32>
    %114 = math.tanh %113 : vector<8x32xf32>
    %115 = vector.extract_strided_slice %112 {offsets = [0, 0], sizes = [8, 32], strides = [1, 1]} : vector<8x96xf32> to vector<8x32xf32>
    %116 = vector.extract_strided_slice %112 {offsets = [0, 32], sizes = [8, 32], strides = [1, 1]} : vector<8x96xf32> to vector<8x32xf32>
    %117 = vector.extract_strided_slice %112 {offsets = [0, 64], sizes = [8, 32], strides = [1, 1]} : vector<8x96xf32> to vector<8x32xf32>
    %118 = arith.mulf %116, %101 : vector<8x32xf32>
    %119 = arith.mulf %115, %114 : vector<8x32xf32>
    %120 = arith.addf %118, %119 : vector<8x32xf32>
    %121 = math.tanh %120 : vector<8x32xf32>
    %122 = arith.mulf %117, %121 : vector<8x32xf32>
    %123 = vector.extract_strided_slice %5 {offsets = [48, 0], sizes = [8, 128], strides = [1, 1]} : vector<64x128xf32> to vector<8x128xf32>
    %cst_21 = arith.constant dense<0.000000e+00> : vector<8x128xf32>
    %124 = tpu.matmul %122, %6, %cst_21 {dimension_numbers = #tpu.dot_dimension_numbers<[1], [0], [0], [1], [0, 0, 1, 1], [], []>} : vector<8x32xf32>, vector<32x128xf32>, vector<8x128xf32> -> vector<8x128xf32>
    %125 = arith.addf %123, %124 : vector<8x128xf32>
    %126 = vector.extract_strided_slice %125 {offsets = [0, 0], sizes = [8, 96], strides = [1, 1]} : vector<8x128xf32> to vector<8x96xf32>
    %127 = arith.negf %126 : vector<8x96xf32>
    %128 = math.exp %127 : vector<8x96xf32>
    %cst_22 = arith.constant 1.000000e+00 : f32
    %129 = vector.broadcast %cst_22 : f32 to vector<8x96xf32>
    %130 = arith.addf %129, %128 : vector<8x96xf32>
    %131 = arith.divf %129, %130 : vector<8x96xf32>
    %132 = vector.extract_strided_slice %125 {offsets = [0, 96], sizes = [8, 32], strides = [1, 1]} : vector<8x128xf32> to vector<8x32xf32>
    %133 = math.tanh %132 : vector<8x32xf32>
    %134 = vector.extract_strided_slice %131 {offsets = [0, 0], sizes = [8, 32], strides = [1, 1]} : vector<8x96xf32> to vector<8x32xf32>
    %135 = vector.extract_strided_slice %131 {offsets = [0, 32], sizes = [8, 32], strides = [1, 1]} : vector<8x96xf32> to vector<8x32xf32>
    %136 = vector.extract_strided_slice %131 {offsets = [0, 64], sizes = [8, 32], strides = [1, 1]} : vector<8x96xf32> to vector<8x32xf32>
    %137 = arith.mulf %135, %120 : vector<8x32xf32>
    %138 = arith.mulf %134, %133 : vector<8x32xf32>
    %139 = arith.addf %137, %138 : vector<8x32xf32>
    %140 = math.tanh %139 : vector<8x32xf32>
    %141 = arith.mulf %136, %140 : vector<8x32xf32>
    %142 = vector.extract_strided_slice %5 {offsets = [56, 0], sizes = [8, 128], strides = [1, 1]} : vector<64x128xf32> to vector<8x128xf32>
    %cst_23 = arith.constant dense<0.000000e+00> : vector<8x128xf32>
    %143 = tpu.matmul %141, %6, %cst_23 {dimension_numbers = #tpu.dot_dimension_numbers<[1], [0], [0], [1], [0, 0, 1, 1], [], []>} : vector<8x32xf32>, vector<32x128xf32>, vector<8x128xf32> -> vector<8x128xf32>
    %144 = arith.addf %142, %143 : vector<8x128xf32>
    %145 = vector.extract_strided_slice %144 {offsets = [0, 0], sizes = [8, 96], strides = [1, 1]} : vector<8x128xf32> to vector<8x96xf32>
    %146 = arith.negf %145 : vector<8x96xf32>
    %147 = math.exp %146 : vector<8x96xf32>
    %cst_24 = arith.constant 1.000000e+00 : f32
    %148 = vector.broadcast %cst_24 : f32 to vector<8x96xf32>
    %149 = arith.addf %148, %147 : vector<8x96xf32>
    %150 = arith.divf %148, %149 : vector<8x96xf32>
    %151 = vector.extract_strided_slice %144 {offsets = [0, 96], sizes = [8, 32], strides = [1, 1]} : vector<8x128xf32> to vector<8x32xf32>
    %152 = math.tanh %151 : vector<8x32xf32>
    %153 = vector.extract_strided_slice %150 {offsets = [0, 0], sizes = [8, 32], strides = [1, 1]} : vector<8x96xf32> to vector<8x32xf32>
    %154 = vector.extract_strided_slice %150 {offsets = [0, 32], sizes = [8, 32], strides = [1, 1]} : vector<8x96xf32> to vector<8x32xf32>
    %155 = vector.extract_strided_slice %150 {offsets = [0, 64], sizes = [8, 32], strides = [1, 1]} : vector<8x96xf32> to vector<8x32xf32>
    %156 = arith.mulf %154, %139 : vector<8x32xf32>
    %157 = arith.mulf %153, %152 : vector<8x32xf32>
    %158 = arith.addf %156, %157 : vector<8x32xf32>
    %159 = math.tanh %158 : vector<8x32xf32>
    %160 = arith.mulf %155, %159 : vector<8x32xf32>
    %c0_25 = arith.constant 0 : index
    %c0_26 = arith.constant 0 : index
    %161 = vector.load %arg4[%c0_25, %c0_26] : memref<32x128xf32, #tpu.memory_space<vmem>>, vector<32x128xf32>
    %cst_27 = arith.constant dense<0.000000e+00> : vector<8x128xf32>
    %162 = tpu.matmul %160, %161, %cst_27 {dimension_numbers = #tpu.dot_dimension_numbers<[1], [0], [0], [1], [0, 0, 1, 1], [], []>} : vector<8x32xf32>, vector<32x128xf32>, vector<8x128xf32> -> vector<8x128xf32>
    %c0_28 = arith.constant 0 : index
    %c0_29 = arith.constant 0 : index
    %163 = vector.load %arg5[%c0_28, %c0_29] : memref<1x128xf32, #tpu.memory_space<vmem>>, vector<1x128xf32>
    %164 = vector.broadcast %163 : vector<1x128xf32> to vector<8x128xf32>
    %165 = arith.addf %162, %164 : vector<8x128xf32>
    %c0_30 = arith.constant 0 : index
    %c0_31 = arith.constant 0 : index
    %166 = vector.load %arg6[%c0_30, %c0_31] : memref<8x128xf32, #tpu.memory_space<vmem>>, vector<8x128xf32>
    tpu.vector_store %arg6[%c0_30, %c0_31], %165 {strides = array<i32>} : memref<8x128xf32, #tpu.memory_space<vmem>>, vector<8x128xf32>,
    return
  }
}

</mosaic_0001>

<bundles_post_ra>
// kernel: telstm_forward.1
= control target key start
LH: loop header
LB: loop body
LE: loop exit
PB: predicated region body
PF: predicated region fallthrough
CT: control target
= control target key end

     0   :  { %vm38_vm0 = vcmask 130048   ;;  %s994_s0 = inlined_call_operand.vmem [shape: f32[64,16], index: 0, kind: input, shape index: {}]   ;;  %s995_s1 = inlined_call_operand.vmem [shape: f32[16,128], index: 1, kind: input, shape index: {}]   ;;  %s996_s2 = inlined_call_operand.vmem [shape: f32[32,128], index: 2, kind: input, shape index: {}]   ;;  %s997_s3 = inlined_call_operand.vmem [shape: f32[1,128], index: 3, kind: input, shape index: {}]   ;;  %s998_s4 = inlined_call_operand.vmem [shape: f32[32,128], index: 4, kind: input, shape index: {}]   ;;  %s999_s5 = inlined_call_operand.vmem [shape: f32[1,128], index: 5, kind: input, shape index: {}]   ;;  %s1000_s6 = inlined_call_operand.hbm [shape: f32[8,128], index: 6, kind: output, shape index: {}]  }
   0x1   :  { %v33_v0 = vld [vmem:[%s995_s1 + $0x8] sm:$0xff]  ;;  %v32_v1 = vld [vmem:[%s995_s1] sm:$0xff]  ;;  %v836_v3 = vld [vmem:[%s996_s2 + $0x18] sm:$0xff] }
   0x2   :  { %685 = vmatpush.msra.mxu1 %v33_v0  ;;  %v29_v2 = vld [vmem:[%s994_s0 + $0x28] sm:$0xff]  ;;  %77 = vmatpush.msra.mxu0 %v33_v0  ;;  %v24_v4 = vld [vmem:[%s994_s0] sm:$0xff] }
   0x3   :  { %686 = vmatpush.msra.mxu2 %v33_v0  ;;  %250 = vmatpush.msra.mxu3 %v836_v3 }
   0x4   :  { %687 = vmatpush.msra.mxu1 %v32_v1  ;;  %78 = vmatpush.msra.mxu0 %v32_v1 }
   0x5   :  { %11 = vsyncpa [#allocation3], 0  ;;  %666 = vmatmul.msk.f32.vlgmr.msra.gmra.mxu1 %vm38_vm0, %v29_v2  ;;  %v846_v5 = vld [vmem:[%s996_s2 + $0x10] sm:$0xff]  ;;  %661 = vmatmul.msk.f32.vlgmr.msra.gmra.mxu0 %vm38_vm0, %v24_v4  ;;  %v853_v6 = vld [vmem:[%s996_s2 + $0x8] sm:$0xff]  ;;  %v785_v8 = vmov 0.0   ;;  %s786_s13 = smov 32  }
   0x6   :  { %124 = vmatpush.msrb.mxu1 %v836_v3  ;;  %688 = vmatpush.msra.mxu2 %v32_v1  ;;  %v861_v7 = vld [vmem:[%s996_s2] sm:$0xff]  ;;  %v30_v35 = vld [vmem:[%s994_s0 + $0x30] sm:$0xff]  ;;  %v31_v36 = vld [vmem:[%s994_s0 + $0x38] sm:$0xff]  ;;  %s787_s17 = smov 64   ;;  %vm108_vm5 = vcmask 261120   ;;  %s788_s10 = smov [#allocation2]  }
   0x7   :  { %251 = vmatpush.msra.mxu3 %v846_v5  ;;  %v887_v11 = vld [vmem:[%s997_s3] ss:$0 sm:$0xff]  ;;  %667 = vmatmul.msk.f32.vlgmr.msra.gmra.mxu2 %vm38_vm0, %v30_v35  ;;  %v25_v39 = vld [vmem:[%s994_s0 + $0x8] sm:$0xff]  ;;  %s650_s11 = sshll.u32 %s788_s10, 4  ;;  %s651_s11 = int_to_ptr.vmem [resolvable:$true] %s650_s11 }
   0x8   :  { %187 = vmatpush.msrb.mxu2 %v836_v3  ;;  %125 = vmatpush.msrb.mxu1 %v846_v5 }
   0x9   :  { %252 = vmatpush.msra.mxu3 %v853_v6 }
   0xa   :  { %188 = vmatpush.msrb.mxu2 %v846_v5  ;;  %126 = vmatpush.msrb.mxu1 %v853_v6 }
   0xb   :  { %253 = vmatpush.msra.mxu3 %v861_v7 }
   0xc   :  { %189 = vmatpush.msrb.mxu2 %v853_v6  ;;  %127 = vmatpush.msrb.mxu1 %v861_v7 }
   0xd   :  { %439 = vmatpush.msrb.mxu3 %v836_v3  ;;  %128 = vmatmul.f32.vlgmr.msrb.gmra.mxu1 %v785_v8 }
   0xe   :  { %190 = vmatpush.msrb.mxu2 %v861_v7  ;;  %313 = vmatpush.msra.mxu1 %v836_v3 }
   0xf   :  { %440 = vmatpush.msrb.mxu3 %v846_v5  ;;  %668 = vmatmul.msk.f32.gmra.mxu2 %vm38_vm0, %v31_v36 }
  0x10   :  { %314 = vmatpush.msra.mxu1 %v846_v5  ;;  %376 = vmatpush.msra.mxu2 %v836_v3 }
  0x11   :  { %441 = vmatpush.msrb.mxu3 %v853_v6  ;;  %662 = vmatmul.msk.f32.gmra.mxu0 %vm38_vm0, %v25_v39 }
  0x12   :  { %315 = vmatpush.msra.mxu1 %v853_v6  ;;  %377 = vmatpush.msra.mxu2 %v846_v5 }
  0x13   :  { %442 = vmatpush.msrb.mxu3 %v861_v7 }
  0x14   :  { %316 = vmatpush.msra.mxu1 %v861_v7  ;;  %378 = vmatpush.msra.mxu2 %v853_v6 }
  0x16   :  { %502 = vmatpush.msrb.mxu1 %v836_v3  ;;  %379 = vmatpush.msra.mxu2 %v861_v7 }
  0x18   :  { %503 = vmatpush.msrb.mxu1 %v846_v5 }
  0x1a   :  { %504 = vmatpush.msrb.mxu1 %v853_v6 }
  0x1c   :  { %505 = vmatpush.msrb.mxu1 %v861_v7 }
  0x82   :  { %v882_v9 = vpop.f32.mrf.mxu1  ;;  %v80_v10 = vpop.f32.mrf.mxu0 }
  0x83   :  { %v81_v12 = vadd.f32 %v887_v11, %v80_v10 }
  0x8a   :  { %v129_v13 = vpop.f32.mrf.mxu1  ;;  %v915_v41 = vpop.f32.mrf.mxu2 }
  0x8b   :  { %v132_v14 = vadd.f32 %v129_v13, %v81_v12 }
  0x8d   :  { %695 = vtanh.f32 %v132_v14  ;;  %v669_v16 = vmul.f32 -1.442695, %v132_v14 }
  0x8e   :  { %v83_v43 = vpop.f32.mrf.mxu0 }
  0x8f   :  { %697 = vpow2.f32 %v669_v16  ;;  %v84_v44 = vadd.f32 %v887_v11, %v83_v43 }
  0x92   :  { %v917_v42 = vpop.f32.mrf.mxu2 }
  0x93   :  { %v696_v15 = vpop.eup %695 }
  0x94   :  { %155 = vrot.lane.b32.xlu0 %v696_v15, %s786_s13 }
  0x95   :  { %v698_v17 = vpop.eup %697 }
  0x96   :  { %v136_v18 = vadd.f32 1.0, %v698_v17 }
  0x98   :  { %699 = vrcp.f32 %v136_v18  ;;  %v148_v24 = vand.u32 2147483648, %v136_v18  ;;  %vm142_vm2 = vweird.f32 %v136_v18  ;;  %v146_v25 = vand.u32 2147483647, %v136_v18 }
  0x9a   :  { %v149_v27 = vor.u32 1.1754944e-38, %v148_v24  ;;  %vm147_vm4 = vcmp.eq.f32.partialorder %v146_v25, 8.507059e+37 }
  0x9e   :  { %v700_v19 = vpop.eup %699 }
  0x9f   :  { %v138_v20 = vmul.f32 %v700_v19, %v136_v18  ;;  %vm143_vm1 = vweird.f32 %v700_v19 }
  0xa0   :  { %vm144_vm3 = vmor %vm142_vm2, %vm143_vm1 }
  0xa1   :  { %v139_v21 = vsub.f32 1.0, %v138_v20 }
  0xa3   :  { %v140_v22 = vmul.f32 %v700_v19, %v139_v21 }
  0xa5   :  { %v141_v23 = vadd.f32 %v700_v19, %v140_v22 }
  0xa7   :  { %v145_v26 = vsel %vm144_vm3, %v700_v19, %v141_v23 }
  0xa8   :  { %v150_v29 = vsel %vm147_vm4, %v149_v27, %v145_v26 }
  0xa9   :  { %v153_v31 = vmul.f32 0.0, %v150_v29 }
 0x106   :  { %v156_v28 = vpop.permute.xlu0 %155 }
 0x107   :  { %v158_v30 = vmul.f32 %v156_v28, %v150_v29 }
 0x109   :  { %160 = vrot.lane.b32.xlu0 %v158_v30, %s786_s13 }
 0x17b   :  { %v161_v32 = vpop.permute.xlu0 %160 }
 0x17c   :  { %v163_v33 = vadd.f32 %v161_v32, %v153_v31 }
 0x17e   :  { %701 = vtanh.f32 %v163_v33 }
 0x184   :  { %v702_v34 = vpop.eup %701 }
 0x185   :  { %166 = vrot.lane.b32.xlu1 %v702_v34, %s786_s13 }
 0x1f7   :  { %v167_v37 = vpop.permute.xlu1 %166 }
 0x1f8   :  { %v169_v38 = vmul.f32 %v167_v37, %v150_v29 }
 0x1fa   :  { %171 = vrot.lane.b32.xlu1 %v169_v38, %s787_s17 }
 0x26c   :  { %v172_v40 = vpop.permute.xlu1 %171 }
 0x26d   :  { %670 = vmatmul.msk.f32.vlgmr.msrb.gmra.mxu2 %vm108_vm5, %v172_v40 }
 0x26e   :  { %565 = vmatpush.msrb.mxu2 %v836_v3 }
 0x270   :  { %566 = vmatpush.msrb.mxu2 %v846_v5  ;;  %v26_v5 = vld [vmem:[%s994_s0 + $0x10] sm:$0xff] }
 0x271   :  { %663 = vmatmul.msk.f32.gmra.mxu0 %vm38_vm0, %v26_v5 }
 0x272   :  { %567 = vmatpush.msrb.mxu2 %v853_v6 }
 0x274   :  { %568 = vmatpush.msrb.mxu2 %v861_v7 }
 0x2ee   :  { %v86_v7 = vpop.f32.mrf.mxu0 }
 0x2ef   :  { %v87_v8 = vadd.f32 %v887_v11, %v86_v7 }
 0x2f0   :  { %v192_v45 = vpop.f32.mrf.mxu2 }
 0x2f1   :  { %v195_v46 = vadd.f32 %v192_v45, %v84_v44 }
 0x2f3   :  { %703 = vtanh.f32 %v195_v46  ;;  %v671_v48 = vmul.f32 -1.442695, %v195_v46 }
 0x2f5   :  { %705 = vpow2.f32 %v671_v48 }
 0x2f9   :  { %v704_v47 = vpop.eup %703 }
 0x2fa   :  { %218 = vrot.lane.b32.xlu2 %v704_v47, %s786_s13 }
 0x2fb   :  { %v706_v49 = vpop.eup %705 }
 0x2fc   :  { %v199_v50 = vadd.f32 1.0, %v706_v49 }
 0x2fe   :  { %707 = vrcp.f32 %v199_v50  ;;  %v211_v56 = vand.u32 2147483648, %v199_v50  ;;  %vm205_vm7 = vweird.f32 %v199_v50  ;;  %v209_v57 = vand.u32 2147483647, %v199_v50 }
 0x300   :  { %v212_v59 = vor.u32 1.1754944e-38, %v211_v56  ;;  %vm210_vm9 = vcmp.eq.f32.partialorder %v209_v57, 8.507059e+37 }
 0x304   :  { %v708_v51 = vpop.eup %707 }
 0x305   :  { %v201_v52 = vmul.f32 %v708_v51, %v199_v50  ;;  %vm206_vm6 = vweird.f32 %v708_v51 }
 0x306   :  { %vm207_vm8 = vmor %vm205_vm7, %vm206_vm6 }
 0x307   :  { %v202_v53 = vsub.f32 1.0, %v201_v52 }
 0x309   :  { %v203_v54 = vmul.f32 %v708_v51, %v202_v53 }
 0x30b   :  { %v204_v55 = vadd.f32 %v708_v51, %v203_v54 }
 0x30d   :  { %v208_v58 = vsel %vm207_vm8, %v708_v51, %v204_v55 }
 0x30e   :  { %v213_v61 = vsel %vm210_vm9, %v212_v59, %v208_v58 }
 0x30f   :  { %v216_v63 = vmul.f32 %v213_v61, %v163_v33  ;;  %v27_v33 = vld [vmem:[%s994_s0 + $0x18] sm:$0xff] }
 0x310   :  { %664 = vmatmul.msk.f32.gmra.mxu0 %vm38_vm0, %v27_v33 }
 0x354   :  { %v219_v60 = vpop.permute.xlu2 %218 }
 0x355   :  { %v221_v62 = vmul.f32 %v219_v60, %v213_v61 }
 0x357   :  { %223 = vrot.lane.b32.xlu2 %v221_v62, %s786_s13 }
 0x38d   :  { %v89_v37 = vpop.f32.mrf.mxu0 }
 0x38e   :  { %v90_v38 = vadd.f32 %v887_v11, %v89_v37 }
 0x3b1   :  { %v224_v0 = vpop.permute.xlu2 %223 }
 0x3b2   :  { %v226_v1 = vadd.f32 %v224_v0, %v216_v63 }
 0x3b4   :  { %709 = vtanh.f32 %v226_v1 }
 0x3ba   :  { %v710_v2 = vpop.eup %709 }
 0x3bb   :  { %229 = vrot.lane.b32.xlu0 %v710_v2, %s786_s13 }
 0x42d   :  { %v230_v3 = vpop.permute.xlu0 %229 }
 0x42e   :  { %v232_v4 = vmul.f32 %v230_v3, %v213_v61 }
 0x430   :  { %234 = vrot.lane.b32.xlu1 %v232_v4, %s787_s17 }
 0x4a2   :  { %v235_v6 = vpop.permute.xlu1 %234 }
 0x4a3   :  { %672 = vmatmul.msk.f32.vlgmr.msra.gmra.mxu3 %vm108_vm5, %v235_v6 }
 0x526   :  { %v255_v10 = vpop.f32.mrf.mxu3 }
 0x527   :  { %v258_v12 = vadd.f32 %v255_v10, %v87_v8 }
 0x529   :  { %711 = vtanh.f32 %v258_v12  ;;  %v673_v14 = vmul.f32 -1.442695, %v258_v12 }
 0x52b   :  { %713 = vpow2.f32 %v673_v14 }
 0x52f   :  { %v712_v13 = vpop.eup %711 }
 0x530   :  { %281 = vrot.lane.b32.xlu2 %v712_v13, %s786_s13 }
 0x531   :  { %v714_v15 = vpop.eup %713 }
 0x532   :  { %v262_v16 = vadd.f32 1.0, %v714_v15 }
 0x534   :  { %715 = vrcp.f32 %v262_v16  ;;  %v274_v22 = vand.u32 2147483648, %v262_v16  ;;  %vm268_vm11 = vweird.f32 %v262_v16  ;;  %v272_v23 = vand.u32 2147483647, %v262_v16 }
 0x536   :  { %v275_v25 = vor.u32 1.1754944e-38, %v274_v22  ;;  %vm273_vm13 = vcmp.eq.f32.partialorder %v272_v23, 8.507059e+37 }
 0x53a   :  { %v716_v17 = vpop.eup %715 }
 0x53b   :  { %v264_v18 = vmul.f32 %v716_v17, %v262_v16  ;;  %vm269_vm10 = vweird.f32 %v716_v17 }
 0x53c   :  { %vm270_vm12 = vmor %vm268_vm11, %vm269_vm10 }
 0x53d   :  { %v265_v19 = vsub.f32 1.0, %v264_v18 }
 0x53f   :  { %v266_v20 = vmul.f32 %v716_v17, %v265_v19 }
 0x541   :  { %v267_v21 = vadd.f32 %v716_v17, %v266_v20 }
 0x543   :  { %v271_v24 = vsel %vm270_vm12, %v716_v17, %v267_v21 }
 0x544   :  { %v276_v27 = vsel %vm273_vm13, %v275_v25, %v271_v24 }
 0x545   :  { %v279_v29 = vmul.f32 %v276_v27, %v226_v1  ;;  %v28_v1 = vld [vmem:[%s994_s0 + $0x20] sm:$0xff] }
 0x546   :  { %665 = vmatmul.msk.f32.gmra.mxu0 %vm38_vm0, %v28_v1 }
 0x58a   :  { %v282_v26 = vpop.permute.xlu2 %281 }
 0x58b   :  { %v284_v28 = vmul.f32 %v282_v26, %v276_v27 }
 0x58d   :  { %286 = vrot.lane.b32.xlu0 %v284_v28, %s786_s13 }
 0x5c3   :  { %v92_v3 = vpop.f32.mrf.mxu0 }
 0x5c4   :  { %v93_v4 = vadd.f32 %v887_v11, %v92_v3 }
 0x5ff   :  { %v287_v30 = vpop.permute.xlu0 %286 }
 0x600   :  { %v289_v31 = vadd.f32 %v287_v30, %v279_v29 }
 0x602   :  { %717 = vtanh.f32 %v289_v31 }
 0x608   :  { %v718_v32 = vpop.eup %717 }
 0x609   :  { %292 = vrot.lane.b32.xlu1 %v718_v32, %s786_s13  ;;  %v96_v32 = vadd.f32 %v887_v11, %v882_v9 }
 0x67b   :  { %v293_v34 = vpop.permute.xlu1 %292 }
 0x67c   :  { %v295_v35 = vmul.f32 %v293_v34, %v276_v27 }
 0x67e   :  { %297 = vrot.lane.b32.xlu2 %v295_v35, %s787_s17 }
 0x6d8   :  { %v298_v36 = vpop.permute.xlu2 %297 }
 0x6d9   :  { %674 = vmatmul.msk.f32.vlgmr.msra.gmra.mxu1 %vm108_vm5, %v298_v36 }
 0x756   :  { %v318_v39 = vpop.f32.mrf.mxu1 }
 0x757   :  { %v321_v40 = vadd.f32 %v318_v39, %v90_v38 }
 0x759   :  { %719 = vtanh.f32 %v321_v40  ;;  %v675_v44 = vmul.f32 -1.442695, %v321_v40 }
 0x75b   :  { %721 = vpow2.f32 %v675_v44 }
 0x75f   :  { %v720_v43 = vpop.eup %719 }
 0x760   :  { %344 = vrot.lane.b32.xlu0 %v720_v43, %s786_s13 }
 0x761   :  { %v722_v45 = vpop.eup %721 }
 0x762   :  { %v325_v46 = vadd.f32 1.0, %v722_v45 }
 0x764   :  { %723 = vrcp.f32 %v325_v46  ;;  %v337_v52 = vand.u32 2147483648, %v325_v46  ;;  %vm331_vm15 = vweird.f32 %v325_v46  ;;  %v335_v53 = vand.u32 2147483647, %v325_v46 }
 0x766   :  { %v338_v55 = vor.u32 1.1754944e-38, %v337_v52  ;;  %vm336_vm2 = vcmp.eq.f32.partialorder %v335_v53, 8.507059e+37 }
 0x76a   :  { %v724_v47 = vpop.eup %723 }
 0x76b   :  { %v327_v48 = vmul.f32 %v724_v47, %v325_v46  ;;  %vm332_vm14 = vweird.f32 %v724_v47 }
 0x76c   :  { %vm333_vm1 = vmor %vm331_vm15, %vm332_vm14 }
 0x76d   :  { %v328_v49 = vsub.f32 1.0, %v327_v48 }
 0x76f   :  { %v329_v50 = vmul.f32 %v724_v47, %v328_v49 }
 0x771   :  { %v330_v51 = vadd.f32 %v724_v47, %v329_v50 }
 0x773   :  { %v334_v54 = vsel %vm333_vm1, %v724_v47, %v330_v51 }
 0x774   :  { %v339_v57 = vsel %vm336_vm2, %v338_v55, %v334_v54 }
 0x775   :  { %v342_v59 = vmul.f32 %v339_v57, %v289_v31 }
 0x7d2   :  { %v345_v56 = vpop.permute.xlu0 %344 }
 0x7d3   :  { %v347_v58 = vmul.f32 %v345_v56, %v339_v57 }
 0x7d5   :  { %349 = vrot.lane.b32.xlu1 %v347_v58, %s786_s13 }
 0x847   :  { %v350_v60 = vpop.permute.xlu1 %349 }
 0x848   :  { %v352_v61 = vadd.f32 %v350_v60, %v342_v59  ;;  %v99_v59 = vadd.f32 %v887_v11, %v915_v41 }
 0x84a   :  { %725 = vtanh.f32 %v352_v61 }
 0x850   :  { %v726_v62 = vpop.eup %725 }
 0x851   :  { %355 = vrot.lane.b32.xlu2 %v726_v62, %s786_s13 }
 0x8ab   :  { %v356_v63 = vpop.permute.xlu2 %355 }
 0x8ac   :  { %v358_v0 = vmul.f32 %v356_v63, %v339_v57 }
 0x8ae   :  { %360 = vrot.lane.b32.xlu0 %v358_v0, %s787_s17 }
 0x920   :  { %v361_v2 = vpop.permute.xlu0 %360 }
 0x921   :  { %676 = vmatmul.msk.f32.vlgmr.msra.gmra.mxu2 %vm108_vm5, %v361_v2 }
 0x9a4   :  { %v381_v5 = vpop.f32.mrf.mxu2 }
 0x9a5   :  { %v384_v6 = vadd.f32 %v381_v5, %v93_v4 }
 0x9a7   :  { %727 = vtanh.f32 %v384_v6  ;;  %v677_v8 = vmul.f32 -1.442695, %v384_v6 }
 0x9a9   :  { %729 = vpow2.f32 %v677_v8 }
 0x9ad   :  { %v728_v7 = vpop.eup %727 }
 0x9ae   :  { %407 = vrot.lane.b32.xlu1 %v728_v7, %s786_s13 }
 0x9af   :  { %v730_v10 = vpop.eup %729 }
 0x9b0   :  { %v388_v12 = vadd.f32 1.0, %v730_v10 }
 0x9b2   :  { %731 = vrcp.f32 %v388_v12  ;;  %v400_v18 = vand.u32 2147483648, %v388_v12  ;;  %vm394_vm3 = vweird.f32 %v388_v12  ;;  %v398_v19 = vand.u32 2147483647, %v388_v12 }
 0x9b4   :  { %v401_v21 = vor.u32 1.1754944e-38, %v400_v18  ;;  %vm399_vm6 = vcmp.eq.f32.partialorder %v398_v19, 8.507059e+37 }
 0x9b8   :  { %v732_v13 = vpop.eup %731 }
 0x9b9   :  { %v390_v14 = vmul.f32 %v732_v13, %v388_v12  ;;  %vm395_vm0 = vweird.f32 %v732_v13 }
 0x9ba   :  { %vm396_vm4 = vmor %vm394_vm3, %vm395_vm0 }
 0x9bb   :  { %v391_v15 = vsub.f32 1.0, %v390_v14 }
 0x9bd   :  { %v392_v16 = vmul.f32 %v732_v13, %v391_v15 }
 0x9bf   :  { %v393_v17 = vadd.f32 %v732_v13, %v392_v16 }
 0x9c1   :  { %v397_v20 = vsel %vm396_vm4, %v732_v13, %v393_v17 }
 0x9c2   :  { %v402_v23 = vsel %vm399_vm6, %v401_v21, %v397_v20 }
 0x9c3   :  { %v405_v25 = vmul.f32 %v402_v23, %v352_v61 }
 0xa20   :  { %v408_v22 = vpop.permute.xlu1 %407 }
 0xa21   :  { %v410_v24 = vmul.f32 %v408_v22, %v402_v23  ;;  %v102_v22 = vadd.f32 %v887_v11, %v917_v42 }
 0xa23   :  { %412 = vrot.lane.b32.xlu2 %v410_v24, %s786_s13 }
 0xa7d   :  { %v413_v26 = vpop.permute.xlu2 %412 }
 0xa7e   :  { %v415_v27 = vadd.f32 %v413_v26, %v405_v25 }
 0xa80   :  { %733 = vtanh.f32 %v415_v27 }
 0xa86   :  { %v734_v28 = vpop.eup %733 }
 0xa87   :  { %418 = vrot.lane.b32.xlu0 %v734_v28, %s786_s13 }
 0xaf9   :  { %v419_v29 = vpop.permute.xlu0 %418 }
 0xafa   :  { %v421_v30 = vmul.f32 %v419_v29, %v402_v23 }
 0xafc   :  { %423 = vrot.lane.b32.xlu1 %v421_v30, %s787_s17 }
 0xb6e   :  { %v424_v31 = vpop.permute.xlu1 %423 }
 0xb6f   :  { %678 = vmatmul.msk.f32.vlgmr.msrb.gmra.mxu3 %vm108_vm5, %v424_v31 }
 0xbf2   :  { %v444_v33 = vpop.f32.mrf.mxu3 }
 0xbf3   :  { %v447_v34 = vadd.f32 %v444_v33, %v96_v32 }
 0xbf5   :  { %735 = vtanh.f32 %v447_v34  ;;  %v679_v36 = vmul.f32 -1.442695, %v447_v34 }
 0xbf7   :  { %737 = vpow2.f32 %v679_v36 }
 0xbfb   :  { %v736_v35 = vpop.eup %735 }
 0xbfc   :  { %470 = vrot.lane.b32.xlu2 %v736_v35, %s786_s13 }
 0xbfd   :  { %v738_v37 = vpop.eup %737 }
 0xbfe   :  { %v451_v38 = vadd.f32 1.0, %v738_v37 }
 0xc00   :  { %739 = vrcp.f32 %v451_v38  ;;  %v463_v46 = vand.u32 2147483648, %v451_v38  ;;  %vm457_vm8 = vweird.f32 %v451_v38  ;;  %v461_v9 = vand.u32 2147483647, %v451_v38 }
 0xc02   :  { %v464_v48 = vor.u32 1.1754944e-38, %v463_v46  ;;  %vm462_vm10 = vcmp.eq.f32.partialorder %v461_v9, 8.507059e+37  ;;  %v613_v46 = vld [vmem:[%s998_s4 + $0x10] sm:$0xff]  ;;  %v612_v9 = vld [vmem:[%s998_s4 + $0x8] sm:$0xff] }
 0xc06   :  { %v740_v39 = vpop.eup %739 }
 0xc07   :  { %v453_v40 = vmul.f32 %v740_v39, %v451_v38  ;;  %vm458_vm7 = vweird.f32 %v740_v39 }
 0xc08   :  { %vm459_vm9 = vmor %vm457_vm8, %vm458_vm7 }
 0xc09   :  { %v454_v43 = vsub.f32 1.0, %v453_v40 }
 0xc0b   :  { %v455_v44 = vmul.f32 %v740_v39, %v454_v43 }
 0xc0d   :  { %v456_v45 = vadd.f32 %v740_v39, %v455_v44 }
 0xc0f   :  { %v460_v47 = vsel %vm459_vm9, %v740_v39, %v456_v45  ;;  %v614_v45 = vld [vmem:[%s998_s4 + $0x18] sm:$0xff] }
 0xc10   :  { %v465_v50 = vsel %vm462_vm10, %v464_v48, %v460_v47  ;;  %636 = vmatpush.msra.mxu3 %v614_v45  ;;  %v611_v47 = vld [vmem:[%s998_s4] sm:$0xff] }
 0xc11   :  { %v468_v52 = vmul.f32 %v465_v50, %v415_v27 }
 0xc12   :  { %637 = vmatpush.msra.mxu3 %v613_v46 }
 0xc14   :  { %638 = vmatpush.msra.mxu3 %v612_v9 }
 0xc16   :  { %639 = vmatpush.msra.mxu3 %v611_v47 }
 0xc56   :  { %v471_v49 = vpop.permute.xlu2 %470 }
 0xc57   :  { %v473_v51 = vmul.f32 %v471_v49, %v465_v50 }
 0xc59   :  { %475 = vrot.lane.b32.xlu0 %v473_v51, %s786_s13  ;;  %v694_v51 = vld [vmem:[%s999_s5] ss:$0 sm:$0xff] }
 0xccb   :  { %v476_v53 = vpop.permute.xlu0 %475 }
 0xccc   :  { %v478_v54 = vadd.f32 %v476_v53, %v468_v52 }
 0xcce   :  { %741 = vtanh.f32 %v478_v54 }
 0xcd4   :  { %v742_v55 = vpop.eup %741 }
 0xcd5   :  { %481 = vrot.lane.b32.xlu1 %v742_v55, %s786_s13 }
 0xd47   :  { %v482_v56 = vpop.permute.xlu1 %481 }
 0xd48   :  { %v484_v57 = vmul.f32 %v482_v56, %v465_v50 }
 0xd4a   :  { %486 = vrot.lane.b32.xlu2 %v484_v57, %s787_s17 }
 0xda4   :  { %v487_v58 = vpop.permute.xlu2 %486 }
 0xda5   :  { %680 = vmatmul.msk.f32.vlgmr.msrb.gmra.mxu1 %vm108_vm5, %v487_v58 }
 0xe22   :  { %v507_v60 = vpop.f32.mrf.mxu1 }
 0xe23   :  { %v510_v61 = vadd.f32 %v507_v60, %v99_v59 }
 0xe25   :  { %743 = vtanh.f32 %v510_v61  ;;  %v681_v63 = vmul.f32 -1.442695, %v510_v61 }
 0xe27   :  { %745 = vpow2.f32 %v681_v63 }
 0xe2b   :  { %v744_v62 = vpop.eup %743 }
 0xe2c   :  { %533 = vrot.lane.b32.xlu0 %v744_v62, %s786_s13 }
 0xe2d   :  { %v746_v0 = vpop.eup %745 }
 0xe2e   :  { %v514_v1 = vadd.f32 1.0, %v746_v0 }
 0xe30   :  { %747 = vrcp.f32 %v514_v1  ;;  %v526_v7 = vand.u32 2147483648, %v514_v1  ;;  %vm520_vm12 = vweird.f32 %v514_v1  ;;  %v524_v41 = vand.u32 2147483647, %v514_v1 }
 0xe32   :  { %v527_v10 = vor.u32 1.1754944e-38, %v526_v7  ;;  %vm525_vm14 = vcmp.eq.f32.partialorder %v524_v41, 8.507059e+37 }
 0xe36   :  { %v748_v2 = vpop.eup %747 }
 0xe37   :  { %v516_v3 = vmul.f32 %v748_v2, %v514_v1  ;;  %vm521_vm11 = vweird.f32 %v748_v2 }
 0xe38   :  { %vm522_vm13 = vmor %vm520_vm12, %vm521_vm11 }
 0xe39   :  { %v517_v4 = vsub.f32 1.0, %v516_v3 }
 0xe3b   :  { %v518_v5 = vmul.f32 %v748_v2, %v517_v4 }
 0xe3d   :  { %v519_v6 = vadd.f32 %v748_v2, %v518_v5 }
 0xe3f   :  { %v523_v8 = vsel %vm522_vm13, %v748_v2, %v519_v6 }
 0xe40   :  { %v528_v13 = vsel %vm525_vm14, %v527_v10, %v523_v8 }
 0xe41   :  { %v531_v15 = vmul.f32 %v528_v13, %v478_v54 }
 0xe9e   :  { %v534_v12 = vpop.permute.xlu0 %533 }
 0xe9f   :  { %v536_v14 = vmul.f32 %v534_v12, %v528_v13 }
 0xea1   :  { %538 = vrot.lane.b32.xlu1 %v536_v14, %s786_s13 }
 0xf13   :  { %v539_v16 = vpop.permute.xlu1 %538 }
 0xf14   :  { %v541_v17 = vadd.f32 %v539_v16, %v531_v15 }
 0xf16   :  { %749 = vtanh.f32 %v541_v17 }
 0xf1c   :  { %v750_v18 = vpop.eup %749 }
 0xf1d   :  { %544 = vrot.lane.b32.xlu2 %v750_v18, %s786_s13 }
 0xf77   :  { %v545_v19 = vpop.permute.xlu2 %544 }
 0xf78   :  { %v547_v20 = vmul.f32 %v545_v19, %v528_v13 }
 0xf7a   :  { %549 = vrot.lane.b32.xlu0 %v547_v20, %s787_s17 }
 0xfec   :  { %v550_v21 = vpop.permute.xlu0 %549 }
 0xfed   :  { %682 = vmatmul.msk.f32.vlgmr.msrb.gmra.mxu2 %vm108_vm5, %v550_v21 }
0x1070   :  { %v570_v23 = vpop.f32.mrf.mxu2 }
0x1071   :  { %v573_v24 = vadd.f32 %v570_v23, %v102_v22 }
0x1073   :  { %751 = vtanh.f32 %v573_v24  ;;  %v683_v26 = vmul.f32 -1.442695, %v573_v24 }
0x1075   :  { %753 = vpow2.f32 %v683_v26 }
0x1079   :  { %v752_v25 = vpop.eup %751 }
0x107a   :  { %596 = vrot.lane.b32.xlu1 %v752_v25, %s786_s13 }
0x107b   :  { %v754_v27 = vpop.eup %753 }
0x107c   :  { %v577_v28 = vadd.f32 1.0, %v754_v27 }
0x107e   :  { %755 = vrcp.f32 %v577_v28  ;;  %v589_v34 = vand.u32 2147483648, %v577_v28  ;;  %vm583_vm1 = vweird.f32 %v577_v28  ;;  %v587_v11 = vand.u32 2147483647, %v577_v28 }
0x1080   :  { %v590_v35 = vor.u32 1.1754944e-38, %v589_v34  ;;  %vm588_vm0 = vcmp.eq.f32.partialorder %v587_v11, 8.507059e+37 }
0x1084   :  { %v756_v29 = vpop.eup %755 }
0x1085   :  { %v579_v30 = vmul.f32 %v756_v29, %v577_v28  ;;  %vm584_vm15 = vweird.f32 %v756_v29 }
0x1086   :  { %vm585_vm2 = vmor %vm583_vm1, %vm584_vm15 }
0x1087   :  { %v580_v31 = vsub.f32 1.0, %v579_v30 }
0x1089   :  { %v581_v32 = vmul.f32 %v756_v29, %v580_v31 }
0x108b   :  { %v582_v33 = vadd.f32 %v756_v29, %v581_v32 }
0x108d   :  { %v586_v42 = vsel %vm585_vm2, %v756_v29, %v582_v33 }
0x108e   :  { %v591_v37 = vsel %vm588_vm0, %v590_v35, %v586_v42 }
0x108f   :  { %v594_v39 = vmul.f32 %v591_v37, %v541_v17 }
0x10ec   :  { %v597_v36 = vpop.permute.xlu1 %596 }
0x10ed   :  { %v599_v38 = vmul.f32 %v597_v36, %v591_v37 }
0x10ef   :  { %601 = vrot.lane.b32.xlu2 %v599_v38, %s786_s13 }
0x1149   :  { %v602_v40 = vpop.permute.xlu2 %601 }
0x114a   :  { %v604_v43 = vadd.f32 %v602_v40, %v594_v39 }
0x114c   :  { %757 = vtanh.f32 %v604_v43 }
0x1152   :  { %v758_v44 = vpop.eup %757 }
0x1153   :  { %607 = vrot.lane.b32.xlu0 %v758_v44, %s786_s13  ;;  %s652_s13 = sshll.u32 %s1000_s6, 4  ;;  %s653_s13 = int_to_ptr.hbm [resolvable:$true] %s652_s13 }
0x11c5   :  { %v608_v48 = vpop.permute.xlu0 %607 }
0x11c6   :  { %v610_v49 = vmul.f32 %v608_v48, %v591_v37 }
0x11c8   :  { %620 = vrot.lane.b32.xlu1 %v610_v49, %s787_s17 }
0x123a   :  { %v621_v50 = vpop.permute.xlu1 %620 }
0x123b   :  { %684 = vmatmul.msk.f32.vlgmr.msra.gmra.mxu3 %vm108_vm5, %v621_v50 }
0x12be   :  { %v641_v52 = vpop.f32.mrf.mxu3 }
0x12bf   :  { %v642_v53 = vadd.f32 %v694_v51, %v641_v52 }
0x12c1   :  { %644 = vst [vmem:[#allocation2] sm:$0xff] %v642_v53 }
0x12c2   :  { %655 = dma.vmem_to_hbm [thread:$0]  %s651_s11, 128, %s653_s13, [#allocation3]  }
0x12c3   :  { %783 = dma.done.wait [#allocation3], 128  }
0x12c4   :  { %784 = vsyncadd [#allocation3], 4294967168 }
0x12c5   :  { %660 = vsyncpa [#allocation3], 1 }

</bundles_post_ra>
